<compile_context>
chip_gen: v7x
topology: tpu7x:2x2x1
jax: 0.10.0
libtpu: 0.0.40
codegen_flags: <defaults>
</compile_context>

<pallas_src>
import math

import jax
import jax.numpy as jnp
from jax.experimental import pallas as pl
from jax.experimental.pallas import tpu as pltpu

INPUT_FEATURES = 784
H1 = 64
H2 = 16

H_PAD = 128   # padded hidden width (lane-dense); 784 stays unpadded


def _round_up(n, m):
    return ((n + m - 1) // m) * m


def _cdiv(a, b):
    return -(-a // b)


# ----------------------------------------------------------------------------
# Kernel
# ----------------------------------------------------------------------------
def ae_kernel(x_ref,
              w1_ref, b1_ref,
              w2_ref, b2_ref,
              w3_ref, b3_ref,
              w4_ref, b4_ref,
              o_ref):
    cdt = x_ref.dtype  # storage dtype fed to the MXU (f32 or bf16)

    def dense(h, w_ref, b_ref):
        # MXU matmul with explicit f32 accumulation, bias add in f32.
        acc = jnp.dot(h.astype(cdt), w_ref[...],
                      preferred_element_type=jnp.float32)
        return acc + b_ref[...].astype(jnp.float32)

    # encoder: Linear(784,64) + ReLU          (hidden padded 64 -> 128)
    h = jnp.maximum(dense(x_ref[...], w1_ref, b1_ref), 0.0)
    # encoder: Linear(64,16) + ReLU           (128 -> 128)
    h = jnp.maximum(dense(h, w2_ref, b2_ref), 0.0)
    # decoder: Linear(16,64) + ReLU           (128 -> 128)
    h = jnp.maximum(dense(h, w3_ref, b3_ref), 0.0)
    # decoder: Linear(64,784) + Sigmoid       (128 -> 784, unpadded output)
    z = dense(h, w4_ref, b4_ref)
    # Exact sigmoid: kernel is HBM-bound, so the EUP exp + VALU divide have
    # plenty of slack; no accuracy is traded away.
    o_ref[...] = (1.0 / (1.0 + jnp.exp(-z))).astype(o_ref.dtype)


# ----------------------------------------------------------------------------
# Wrapper
# ----------------------------------------------------------------------------
def _choose_tiling(B, tile_b):
    """Pick (tile_b_eff, n_tiles, Bp) so that batch padding is minimal and the
    grid has >= 2 steps whenever there is enough work (v7x megacore)."""
    n_tiles = max(1, _cdiv(B, tile_b))
    if B > 8:
        n_tiles = max(n_tiles, 2)          # let both v7x TensorCores work
    tile_b_eff = _round_up(_cdiv(B, n_tiles), 8)
    Bp = tile_b_eff * n_tiles
    return tile_b_eff, n_tiles, Bp


def ae_forward(x, pparams, *, tile_b=512):
    """x: (B, 784). pparams: padded params from prepare_params()."""
    B, Fin = x.shape
    assert Fin == INPUT_FEATURES
    dtype = pparams["w1"].dtype

    tile_b_eff, n_tiles, Bp = _choose_tiling(B, tile_b)

    # Cast once outside the kernel; pad batch rows only when needed (jnp.pad is
    # a single fused pass).  No feature-dim padding of x at all.
    xs = x.astype(dtype)
    if Bp != B:
        xs = jnp.pad(xs, ((0, Bp - B), (0, 0)))

    param_order = ("w1", "b1", "w2", "b2", "w3", "b3", "w4", "b4")

    def whole(arr):
        # All params are 2D; whole-array block (constant index map -> DMA'd once).
        return pl.BlockSpec(arr.shape, lambda i: (0, 0))

    in_specs = [pl.BlockSpec((tile_b_eff, INPUT_FEATURES), lambda i: (i, 0))] + \
               [whole(pparams[k]) for k in param_order]
    out_spec = pl.BlockSpec((tile_b_eff, INPUT_FEATURES), lambda i: (i, 0))

    # Advisory cost estimate with the *actual* DMA volume (padded batch rows).
    itemsize = jnp.dtype(dtype).itemsize
    param_bytes = sum(int(pparams[k].size) * pparams[k].dtype.itemsize
                      for k in param_order)
    flops = 2 * B * (INPUT_FEATURES * H1 + H1 * H2 + H2 * H1 + H1 * INPUT_FEATURES)
    bytes_accessed = 2 * Bp * INPUT_FEATURES * itemsize + param_bytes
    cost = pl.CostEstimate(flops=flops,
                           transcendentals=Bp * INPUT_FEATURES,
                           bytes_accessed=bytes_accessed)

    out = pl.pallas_call(
        ae_kernel,
        out_shape=jax.ShapeDtypeStruct((Bp, INPUT_FEATURES), dtype),
        grid_spec=pltpu.PrefetchScalarGridSpec(
            num_scalar_prefetch=0,
            grid=(n_tiles,),
            in_specs=in_specs,
            out_specs=out_spec,
        ),
        compiler_params=pltpu.CompilerParams(
            dimension_semantics=("parallel",),      # shard batch tiles across TCs
            vmem_limit_bytes=32 * 1024 * 1024,      # fits tile_b=512 f32 on v5e/v6e/v7x
        ),
        cost_estimate=cost,
    )(xs, *(pparams[k] for k in param_order))

    return out if Bp == B else out[:B]


# ----------------------------------------------------------------------------
# Parameters (PyTorch-equivalent init: xavier_uniform weights, bias = 0.01),
# stored transposed as (in, out) so the kernel computes y = x @ W + b.
# ----------------------------------------------------------------------------
def xavier_uniform(key, fan_in, fan_out, dtype=jnp.float32):
    bound = math.sqrt(6.0 / (fan_in + fan_out))
    return jax.random.uniform(key, (fan_in, fan_out), dtype,
                              minval=-bound, maxval=bound)


def init_params(key):
    k1, k2, k3, k4 = jax.random.split(key, 4)
    bias = lambda n: jnp.full((1, n), 0.01, jnp.float32)
    return {
        "w1": xavier_uniform(k1, INPUT_FEATURES, H1), "b1": bias(H1),
        "w2": xavier_uniform(k2, H1, H2),             "b2": bias(H2),
        "w3": xavier_uniform(k3, H2, H1),             "b3": bias(H1),
        "w4": xavier_uniform(k4, H1, INPUT_FEATURES), "b4": bias(INPUT_FEATURES),
    }


def _pad2(a, rows, cols):
    r, c = a.shape
    return jnp.pad(a, ((0, rows - r), (0, cols - c)))


def prepare_params(p, dtype=jnp.float32):
    """One-time host-side prep: zero-pad only the *hidden* dims to 128 (the
    zero rows/cols make the padding exact) and cast to the storage dtype.
    Use jnp.bfloat16 on v5e/v6e/v7x for the ~2x HBM-traffic win; accumulation
    and the epilogue stay in f32 inside the kernel."""
    return {
        "w1": _pad2(p["w1"], INPUT_FEATURES, H_PAD).astype(dtype),
        "b1": _pad2(p["b1"], 1, H_PAD).astype(dtype),
        "w2": _pad2(p["w2"], H_PAD, H_PAD).astype(dtype),
        "b2": _pad2(p["b2"], 1, H_PAD).astype(dtype),
        "w3": _pad2(p["w3"], H_PAD, H_PAD).astype(dtype),
        "b3": _pad2(p["b3"], 1, H_PAD).astype(dtype),
        "w4": _pad2(p["w4"], H_PAD, INPUT_FEATURES).astype(dtype),
        "b4": p["b4"].astype(dtype),                      # (1, 784) unpadded
    }


def ae_reference(x, p):
    h = jnp.maximum(x @ p["w1"] + p["b1"], 0.0)
    h = jnp.maximum(h @ p["w2"] + p["b2"], 0.0)
    h = jnp.maximum(h @ p["w3"] + p["b3"], 0.0)
    return jax.nn.sigmoid(h @ p["w4"] + p["b4"])


if __name__ == "__main__":
    key = jax.random.PRNGKey(0)
    k_params, k_x = jax.random.split(key)

    params = init_params(k_params)

    B = 16
    x = jax.random.uniform(k_x, (B, INPUT_FEATURES), jnp.float32)
    ref = ae_reference(x, params)

    # f32 storage path (exact): tight tolerance, exercises the 2-step grid.
    out_f32 = ae_forward(x, prepare_params(params, jnp.float32), tile_b=512)
    out_f32 = jax.block_until_ready(out_f32)
    assert out_f32.shape == (B, INPUT_FEATURES)
    err_f32 = float(jnp.max(jnp.abs(out_f32 - ref)))
    assert jnp.allclose(out_f32, ref, atol=1e-5, rtol=0.0), err_f32

    # bf16 storage path (recommended for perf: halves HBM traffic, f32 accum).
    out_bf16 = ae_forward(x, prepare_params(params, jnp.bfloat16), tile_b=512)
    out_bf16 = jax.block_until_ready(out_bf16)
    err_bf16 = float(jnp.max(jnp.abs(out_bf16.astype(jnp.float32) - ref)))
    assert err_bf16 < 5e-2, err_bf16

    print("KERNEL_OK")
</pallas_src>

<mosaic_0001>
module attributes {stable_mosaic.version = 11 : i64} {
  func.func @ae_kernel(%arg0: i32, %arg1: memref<8x784xf32, #tpu.memory_space<vmem>>, %arg2: memref<784x128xf32, #tpu.memory_space<vmem>>, %arg3: memref<1x128xf32, #tpu.memory_space<vmem>>, %arg4: memref<128x128xf32, #tpu.memory_space<vmem>>, %arg5: memref<1x128xf32, #tpu.memory_space<vmem>>, %arg6: memref<128x128xf32, #tpu.memory_space<vmem>>, %arg7: memref<1x128xf32, #tpu.memory_space<vmem>>, %arg8: memref<128x784xf32, #tpu.memory_space<vmem>>, %arg9: memref<1x784xf32, #tpu.memory_space<vmem>>, %arg10: memref<8x784xf32, #tpu.memory_space<vmem>>) attributes {dimension_semantics = [#tpu.dimension_semantics<parallel>], iteration_bounds = array<i64: 2>, scalar_prefetch = 0 : i64, scratch_operands = 0 : i64, tpu.core_type = #tpu.core_type<tc>, window_params = [{transform_indices = @transform_0, window_bounds = array<i64: 8, 784>}, {pipeline_mode = #tpu.pipeline_mode<synchronous>, transform_indices = @transform_1, window_bounds = array<i64: 784, 128>}, {pipeline_mode = #tpu.pipeline_mode<synchronous>, transform_indices = @transform_2, window_bounds = array<i64: 1, 128>}, {pipeline_mode = #tpu.pipeline_mode<synchronous>, transform_indices = @transform_3, window_bounds = array<i64: 128, 128>}, {pipeline_mode = #tpu.pipeline_mode<synchronous>, transform_indices = @transform_4, window_bounds = array<i64: 1, 128>}, {pipeline_mode = #tpu.pipeline_mode<synchronous>, transform_indices = @transform_5, window_bounds = array<i64: 128, 128>}, {pipeline_mode = #tpu.pipeline_mode<synchronous>, transform_indices = @transform_6, window_bounds = array<i64: 1, 128>}, {pipeline_mode = #tpu.pipeline_mode<synchronous>, transform_indices = @transform_7, window_bounds = array<i64: 128, 784>}, {pipeline_mode = #tpu.pipeline_mode<synchronous>, transform_indices = @transform_8, window_bounds = array<i64: 1, 784>}, {transform_indices = @transform_9, window_bounds = array<i64: 8, 784>}]} {
    %c0 = arith.constant 0 : index
    %c0_0 = arith.constant 0 : index
    %0 = vector.load %arg1[%c0, %c0_0] : memref<8x784xf32, #tpu.memory_space<vmem>>, vector<8x784xf32>
    %c0_1 = arith.constant 0 : index
    %c0_2 = arith.constant 0 : index
    %1 = vector.load %arg2[%c0_1, %c0_2] : memref<784x128xf32, #tpu.memory_space<vmem>>, vector<784x128xf32>
    %cst = arith.constant dense<0.000000e+00> : vector<8x128xf32>
    %2 = tpu.matmul %0, %1, %cst {dimension_numbers = #tpu.dot_dimension_numbers<[1], [0], [0], [1], [0, 0, 1, 1], [], []>} : vector<8x784xf32>, vector<784x128xf32>, vector<8x128xf32> -> vector<8x128xf32>
    %c0_3 = arith.constant 0 : index
    %c0_4 = arith.constant 0 : index
    %3 = vector.load %arg3[%c0_3, %c0_4] : memref<1x128xf32, #tpu.memory_space<vmem>>, vector<1x128xf32>
    %4 = vector.broadcast %3 : vector<1x128xf32> to vector<8x128xf32>
    %5 = arith.addf %2, %4 : vector<8x128xf32>
    %cst_5 = arith.constant 0.000000e+00 : f32
    %6 = vector.broadcast %cst_5 : f32 to vector<8x128xf32>
    %7 = arith.maximumf %5, %6 : vector<8x128xf32>
    %c0_6 = arith.constant 0 : index
    %c0_7 = arith.constant 0 : index
    %8 = vector.load %arg4[%c0_6, %c0_7] : memref<128x128xf32, #tpu.memory_space<vmem>>, vector<128x128xf32>
    %cst_8 = arith.constant dense<0.000000e+00> : vector<8x128xf32>
    %9 = tpu.matmul %7, %8, %cst_8 {dimension_numbers = #tpu.dot_dimension_numbers<[1], [0], [0], [1], [0, 0, 1, 1], [], []>} : vector<8x128xf32>, vector<128x128xf32>, vector<8x128xf32> -> vector<8x128xf32>
    %c0_9 = arith.constant 0 : index
    %c0_10 = arith.constant 0 : index
    %10 = vector.load %arg5[%c0_9, %c0_10] : memref<1x128xf32, #tpu.memory_space<vmem>>, vector<1x128xf32>
    %11 = vector.broadcast %10 : vector<1x128xf32> to vector<8x128xf32>
    %12 = arith.addf %9, %11 : vector<8x128xf32>
    %cst_11 = arith.constant 0.000000e+00 : f32
    %13 = vector.broadcast %cst_11 : f32 to vector<8x128xf32>
    %14 = arith.maximumf %12, %13 : vector<8x128xf32>
    %c0_12 = arith.constant 0 : index
    %c0_13 = arith.constant 0 : index
    %15 = vector.load %arg6[%c0_12, %c0_13] : memref<128x128xf32, #tpu.memory_space<vmem>>, vector<128x128xf32>
    %cst_14 = arith.constant dense<0.000000e+00> : vector<8x128xf32>
    %16 = tpu.matmul %14, %15, %cst_14 {dimension_numbers = #tpu.dot_dimension_numbers<[1], [0], [0], [1], [0, 0, 1, 1], [], []>} : vector<8x128xf32>, vector<128x128xf32>, vector<8x128xf32> -> vector<8x128xf32>
    %c0_15 = arith.constant 0 : index
    %c0_16 = arith.constant 0 : index
    %17 = vector.load %arg7[%c0_15, %c0_16] : memref<1x128xf32, #tpu.memory_space<vmem>>, vector<1x128xf32>
    %18 = vector.broadcast %17 : vector<1x128xf32> to vector<8x128xf32>
    %19 = arith.addf %16, %18 : vector<8x128xf32>
    %cst_17 = arith.constant 0.000000e+00 : f32
    %20 = vector.broadcast %cst_17 : f32 to vector<8x128xf32>
    %21 = arith.maximumf %19, %20 : vector<8x128xf32>
    %c0_18 = arith.constant 0 : index
    %c0_19 = arith.constant 0 : index
    %22 = vector.load %arg8[%c0_18, %c0_19] : memref<128x784xf32, #tpu.memory_space<vmem>>, vector<128x784xf32>
    %cst_20 = arith.constant dense<0.000000e+00> : vector<8x784xf32>
    %23 = tpu.matmul %21, %22, %cst_20 {dimension_numbers = #tpu.dot_dimension_numbers<[1], [0], [0], [1], [0, 0, 1, 1], [], []>} : vector<8x128xf32>, vector<128x784xf32>, vector<8x784xf32> -> vector<8x784xf32>
    %c0_21 = arith.constant 0 : index
    %c0_22 = arith.constant 0 : index
    %24 = vector.load %arg9[%c0_21, %c0_22] : memref<1x784xf32, #tpu.memory_space<vmem>>, vector<1x784xf32>
    %25 = vector.broadcast %24 : vector<1x784xf32> to vector<8x784xf32>
    %26 = arith.addf %23, %25 : vector<8x784xf32>
    %cst_23 = arith.constant 0.000000e+00 : f32
    %27 = vector.broadcast %cst_23 : f32 to vector<8x784xf32>
    %28 = arith.subf %27, %26 : vector<8x784xf32>
    %29 = math.exp %28 : vector<8x784xf32>
    %cst_24 = arith.constant 1.000000e+00 : f32
    %30 = vector.broadcast %cst_24 : f32 to vector<8x784xf32>
    %31 = arith.addf %30, %29 : vector<8x784xf32>
    %cst_25 = arith.constant 1.000000e+00 : f32
    %32 = vector.broadcast %cst_25 : f32 to vector<8x784xf32>
    %33 = arith.divf %32, %31 : vector<8x784xf32>
    %c0_26 = arith.constant 0 : index
    %c0_27 = arith.constant 0 : index
    %34 = vector.load %arg10[%c0_26, %c0_27] : memref<8x784xf32, #tpu.memory_space<vmem>>, vector<8x784xf32>
    tpu.vector_store %arg10[%c0_26, %c0_27], %33 {strides = array<i32>} : memref<8x784xf32, #tpu.memory_space<vmem>>, vector<8x784xf32>,
    return
  }
  func.func @transform_0(%arg0: i32) -> (i32, i32) {
    %c0_i32 = arith.constant 0 : i32
    %c0_i32_0 = arith.constant 0 : i32
    return %arg0, %c0_i32 : i32, i32
  }
  func.func @transform_1(%arg0: i32) -> (i32, i32) {
    %c0_i32 = arith.constant 0 : i32
    %c0_i32_0 = arith.constant 0 : i32
    %c0_i32_1 = arith.constant 0 : i32
    return %c0_i32, %c0_i32_0 : i32, i32
  }
  func.func @transform_2(%arg0: i32) -> (i32, i32) {
    %c0_i32 = arith.constant 0 : i32
    %c0_i32_0 = arith.constant 0 : i32
    %c0_i32_1 = arith.constant 0 : i32
    return %c0_i32, %c0_i32_0 : i32, i32
  }
  func.func @transform_3(%arg0: i32) -> (i32, i32) {
    %c0_i32 = arith.constant 0 : i32
    %c0_i32_0 = arith.constant 0 : i32
    %c0_i32_1 = arith.constant 0 : i32
    return %c0_i32, %c0_i32_0 : i32, i32
  }
  func.func @transform_4(%arg0: i32) -> (i32, i32) {
    %c0_i32 = arith.constant 0 : i32
    %c0_i32_0 = arith.constant 0 : i32
    %c0_i32_1 = arith.constant 0 : i32
    return %c0_i32, %c0_i32_0 : i32, i32
  }
  func.func @transform_5(%arg0: i32) -> (i32, i32) {
    %c0_i32 = arith.constant 0 : i32
    %c0_i32_0 = arith.constant 0 : i32
    %c0_i32_1 = arith.constant 0 : i32
    return %c0_i32, %c0_i32_0 : i32, i32
  }
  func.func @transform_6(%arg0: i32) -> (i32, i32) {
    %c0_i32 = arith.constant 0 : i32
    %c0_i32_0 = arith.constant 0 : i32
    %c0_i32_1 = arith.constant 0 : i32
    return %c0_i32, %c0_i32_0 : i32, i32
  }
  func.func @transform_7(%arg0: i32) -> (i32, i32) {
    %c0_i32 = arith.constant 0 : i32
    %c0_i32_0 = arith.constant 0 : i32
    %c0_i32_1 = arith.constant 0 : i32
    return %c0_i32, %c0_i32_0 : i32, i32
  }
  func.func @transform_8(%arg0: i32) -> (i32, i32) {
    %c0_i32 = arith.constant 0 : i32
    %c0_i32_0 = arith.constant 0 : i32
    %c0_i32_1 = arith.constant 0 : i32
    return %c0_i32, %c0_i32_0 : i32, i32
  }
  func.func @transform_9(%arg0: i32) -> (i32, i32) {
    %c0_i32 = arith.constant 0 : i32
    %c0_i32_0 = arith.constant 0 : i32
    return %arg0, %c0_i32 : i32, i32
  }
}

</mosaic_0001>

<bundles_post_ra>
// kernel: tpu_custom_call.1
= control target key start
LH: loop header
LB: loop body
LE: loop exit
PB: predicated region body
PF: predicated region fallthrough
CT: control target
= control target key end

     0   :  { %14 = vsyncpa [#allocation3], 0  ;;  %s3122_s0 = inlined_call_operand.vmem [shape: f32[16,784], index: 0, kind: input, shape index: {}]   ;;  %s3123_s1 = inlined_call_operand.vmem [shape: f32[784,128], index: 1, kind: input, shape index: {}]   ;;  %s3124_s2 = inlined_call_operand.vmem [shape: f32[1,128], index: 2, kind: input, shape index: {}]   ;;  %s3125_s3 = inlined_call_operand.vmem [shape: f32[128,128], index: 3, kind: input, shape index: {}]   ;;  %s3126_s4 = inlined_call_operand.vmem [shape: f32[1,128], index: 4, kind: input, shape index: {}]   ;;  %s3127_s5 = inlined_call_operand.vmem [shape: f32[128,128], index: 5, kind: input, shape index: {}]   ;;  %s3128_s6 = inlined_call_operand.vmem [shape: f32[1,128], index: 6, kind: input, shape index: {}]   ;;  %s3129_s7 = inlined_call_operand.vmem [shape: f32[128,784], index: 7, kind: input, shape index: {}]   ;;  %s3130_s8 = inlined_call_operand.vmem [shape: f32[1,784], index: 8, kind: input, shape index: {}]   ;;  %s3131_s9 = inlined_call_operand.hbm [shape: f32[16,784], index: 9, kind: output, shape index: {}]  }
   0x1   :  { %16 = vsyncpa [#allocation3 + $0x1], 0  ;;  %s2212_s30 = smov 0   ;;  %s2214_s10 = smov 0  }
   0x2   :  { %s2216_s11 = smov 0   ;;  %s2218_s12 = smov 0  }
   0x3 LB: > { %s2233_s13 = sadd.s32 4294967295, %s2156_s12   ;;  %s1471_s14 = sadd.s32 4294967294, %s2156_s12   ;;  %s2156_s12 = sphi %s2218_s12, %s3137_s12   ;;  %s2152_s11 = sphi %s2216_s11, %s3136_s11   ;;  %s2148_s10 = sphi %s2214_s10, %s3135_s10   ;;  %s2144_s30 = sphi %s2212_s30, %s3134_s30  }
   0x4   : > { %s2237_s15 = sadd.s32 1, %s2156_s12   ;;  %s223_s16 = sadd.s32 1, %s2152_s11 }
   0x5   : > { %s220_s17 = ssub.s32 %s2156_s12, %s2237_s15  ;;  %p233_p0 = scmp.ne.s32.totalorder %s2152_s11, %s2148_s10 }
   0x6   : > { %p221_p1 = scmp.eq.s32.totalorder %s220_s17, 0  ;;  %p234_p2 = scmp.eq.s32.totalorder %s2233_s13, 1 }
   0x7   : > { %p239_p3 = scmp.ne.s32.totalorder %s2148_s10, %s2144_s30  ;;  %p240_p4 = scmp.eq.s32.totalorder %s1471_s14, 1 }
   0x8   : > { %s2248_s18 = scalar_select %p221_p1, %s2152_s11, %s223_s16  }
   0x9   : > { %p2250_p5 = por %p234_p2, %p233_p0  ;;  %p2254_p6 = por %p240_p4, %p239_p3 }
   0xa   : > { %p1474_p7 = scmp.ge.s32.totalorder %s2156_s12, 1  ;;  %p290_p8 = scmp.lt.s32.totalorder %s2156_s12, 3 }
   0xc   : > { %p291_p9 = pnand %p1474_p7, %p290_p8 }
   0xd   : > { %v354_v0 = vld [vmem:[%s3123_s1 + $0x80] sm:$0xff] (!%p291_p9)  ;;  %v355_v1 = vld [vmem:[%s3123_s1 + $0x88] sm:$0xff] (!%p291_p9)  ;;  %v356_v11 = vld [vmem:[%s3123_s1 + $0x90] sm:$0xff] (!%p291_p9)  ;;  %p326_p10 = scmp.lt.s32.totalorder (!%p291_p9), %s2233_s13, 1  ;;  %vm2159_vm0 = vmmov (!%p291_p9), 0   ;;  %vm443_vm1 = vcmask (!%p291_p9), 130048  }
   0xe   : > { %294 = sbr.rel (%p291_p9) target bundleno = 1023 (0x3ff), region = 56  ;;  %v338_v2 = vld [vmem:[%s3123_s1] sm:$0xff] (!%p291_p9)  ;;  %v1754_v3 = vpack.c.bf16 (!%p291_p9), %v355_v1, %v354_v0  ;;  %v339_v4 = vld [vmem:[%s3123_s1 + $0x8] sm:$0xff] (!%p291_p9)  ;;  %v357_v13 = vld [vmem:[%s3123_s1 + $0x98] sm:$0xff] (!%p291_p9)  ;;  %s323_s25 = sand.u32 (!%p291_p9), 1, %s2148_s10  }
   0xf   : > { %v386_v5 = vld [vmem:[%s3123_s1 + $0x180] sm:$0xff] (!%p291_p9)  ;;  %v387_v6 = vld [vmem:[%s3123_s1 + $0x188] sm:$0xff] (!%p291_p9)  ;;  %v1756_v7 = vpack.c.bf16 (!%p291_p9), %v339_v4, %v338_v2  ;;  %v340_v14 = vld [vmem:[%s3123_s1 + $0x10] sm:$0xff] (!%p291_p9)  ;;  %v1758_v16 = vpack.c.bf16 (!%p291_p9), %v357_v13, %v356_v11  ;;  %s2021_s27 = smul.u32 (!%p291_p9), 56, %s323_s25 }
  0x10   : > { %v1786_v8 = vpack.c.bf16 (!%p291_p9), %v387_v6, %v386_v5  ;;  %v370_v9 = vld [vmem:[%s3123_s1 + $0x100] sm:$0xff] (!%p291_p9)  ;;  %v371_v10 = vld [vmem:[%s3123_s1 + $0x108] sm:$0xff] (!%p291_p9)  ;;  %1755 = vmatprep.subr.bf16.mxu0 (!%p291_p9), %v1754_v3  ;;  %v341_v15 = vld [vmem:[%s3123_s1 + $0x18] sm:$0xff] (!%p291_p9)  ;;  %s2023_s28 = smul.u32 (!%p291_p9), 896, %s2233_s13 }
  0x11   : > { %v1788_v12 = vpack.c.bf16 (!%p291_p9), %v371_v10, %v370_v9  ;;  %1757 = vmatpush3.bf16.msra.mxu0 (!%p291_p9), %v1756_v7  ;;  %v1760_v17 = vpack.c.bf16 (!%p291_p9), %v341_v15, %v340_v14  ;;  %v388_v18 = vld [vmem:[%s3123_s1 + $0x190] sm:$0xff] (!%p291_p9)  ;;  %v389_v19 = vld [vmem:[%s3123_s1 + $0x198] sm:$0xff] (!%p291_p9)  ;;  %v358_v23 = vld [vmem:[%s3123_s1 + $0xa0] sm:$0xff] (!%p291_p9) }
  0x12   : > { %1787 = vmatprep.subr.bf16.mxu1 (!%p291_p9), %v1786_v8  ;;  %v372_v20 = vld [vmem:[%s3123_s1 + $0x110] sm:$0xff] (!%p291_p9)  ;;  %v1790_v21 = vpack.c.bf16 (!%p291_p9), %v389_v19, %v388_v18  ;;  %v373_v22 = vld [vmem:[%s3123_s1 + $0x118] sm:$0xff] (!%p291_p9)  ;;  %v359_v24 = vld [vmem:[%s3123_s1 + $0xa8] sm:$0xff] (!%p291_p9)  ;;  %1759 = vmatprep.subr.bf16.mxu0 (!%p291_p9), %v1758_v16  ;;  %s3075_s22 = scalar_lea.hbm (!%p291_p9), %s3131_s9, %s2023_s28 }
  0x13   : > { %1789 = vmatpush3.bf16.msra.mxu1 (!%p291_p9), %v1788_v12  ;;  %v1792_v25 = vpack.c.bf16 (!%p291_p9), %v373_v22, %v372_v20  ;;  %v1762_v26 = vpack.c.bf16 (!%p291_p9), %v359_v24, %v358_v23  ;;  %v342_v27 = vld [vmem:[%s3123_s1 + $0x20] sm:$0xff] (!%p291_p9)  ;;  %v343_v28 = vld [vmem:[%s3123_s1 + $0x28] sm:$0xff] (!%p291_p9)  ;;  %v360_v35 = vld [vmem:[%s3123_s1 + $0xb0] sm:$0xff] (!%p291_p9) }
  0x14   : > { %v390_v29 = vld [vmem:[%s3123_s1 + $0x1a0] sm:$0xff] (!%p291_p9)  ;;  %1791 = vmatprep.subr.bf16.mxu1 (!%p291_p9), %v1790_v21  ;;  %v391_v30 = vld [vmem:[%s3123_s1 + $0x1a8] sm:$0xff] (!%p291_p9)  ;;  %v1764_v33 = vpack.c.bf16 (!%p291_p9), %v343_v28, %v342_v27  ;;  %v361_v36 = vld [vmem:[%s3123_s1 + $0xb8] sm:$0xff] (!%p291_p9) }
  0x15   : > { %v374_v31 = vld [vmem:[%s3123_s1 + $0x120] sm:$0xff]  ;;  %v375_v32 = vld [vmem:[%s3123_s1 + $0x128] sm:$0xff]  ;;  %1761 = vmatpush3.bf16.msra.mxu0 %v1760_v17  ;;  %v1794_v34 = vpack.c.bf16 %v391_v30, %v390_v29  ;;  %v344_v37 = vld [vmem:[%s3123_s1 + $0x30] sm:$0xff]  ;;  %v1766_v39 = vpack.c.bf16 %v361_v36, %v360_v35  ;;  %s2354_s21 = scalar_select %p326_p10, %s2233_s13, 1 }
  0x16   : > { %1763 = vmatprep.subr.bf16.mxu0 %v1762_v26  ;;  %v1796_v38 = vpack.c.bf16 %v375_v32, %v374_v31  ;;  %v345_v40 = vld [vmem:[%s3123_s1 + $0x38] sm:$0xff]  ;;  %v392_v41 = vld [vmem:[%s3123_s1 + $0x1b0] sm:$0xff]  ;;  %v362_v46 = vld [vmem:[%s3123_s1 + $0xc0] sm:$0xff]  ;;  %s1398_s13 = scalar_lea.sflag [#allocation3], %s323_s25 }
  0x17   : > { %1793 = vmatpush3.bf16.msra.mxu1 %v1792_v25  ;;  %v393_v42 = vld [vmem:[%s3123_s1 + $0x1b8] sm:$0xff]  ;;  %v376_v44 = vld [vmem:[%s3123_s1 + $0x130] sm:$0xff]  ;;  %v363_v47 = vld [vmem:[%s3123_s1 + $0xc8] sm:$0xff]  ;;  %v1768_v48 = vpack.c.bf16 %v345_v40, %v344_v37  ;;  %s2022_s29 = smul.u32 56, %s2354_s21  ;;  %s3063_s21 = scalar_lea.vmem [#allocation2], %s2021_s27 }
  0x18   : > { %1795 = vmatprep.subr.bf16.mxu1 %v1794_v34  ;;  %v1798_v43 = vpack.c.bf16 %v393_v42, %v392_v41  ;;  %v377_v45 = vld [vmem:[%s3123_s1 + $0x138] sm:$0xff]  ;;  %v394_v49 = vld [vmem:[%s3123_s1 + $0x1c0] sm:$0xff]  ;;  %v395_v50 = vld [vmem:[%s3123_s1 + $0x1c8] sm:$0xff]  ;;  %v1770_v52 = vpack.c.bf16 %v363_v47, %v362_v46  ;;  %s1412_s14 = sshll.u32 %s3063_s21, 4  ;;  %s3077_s14 = int_to_ptr.vmem [resolvable:$true] %s1412_s14 }
  0x19   : > { %1765 = vmatpush3.bf16.msra.mxu0 %v1764_v33  ;;  %v1800_v51 = vpack.c.bf16 %v377_v45, %v376_v44  ;;  %v346_v53 = vld [vmem:[%s3123_s1 + $0x40] sm:$0xff]  ;;  %v347_v54 = vld [vmem:[%s3123_s1 + $0x48] sm:$0xff]  ;;  %v1802_v56 = vpack.c.bf16 %v395_v50, %v394_v49  ;;  %v364_v58 = vld [vmem:[%s3123_s1 + $0xd0] sm:$0xff]  ;;  %s2411_s26 = scalar_lea.vmem %s3122_s0, %s2022_s29  ;;  %v2158_v50 = vmov 0.0|0.0   ;;  %s2094_s23 = scalar_lea.vmem %s3077_s14, 896 }
  0x1a   : > { %1767 = vmatprep.subr.bf16.mxu0 %v1766_v39  ;;  %v378_v55 = vld [vmem:[%s3123_s1 + $0x140] sm:$0xff]  ;;  %v379_v57 = vld [vmem:[%s3123_s1 + $0x148] sm:$0xff]  ;;  %v365_v59 = vld [vmem:[%s3123_s1 + $0xd8] sm:$0xff]  ;;  %v1772_v62 = vpack.c.bf16 %v347_v54, %v346_v53  ;;  %p2095_p11 = scmp.ne.s32.totalorder %s3077_s14, %s2094_s23  ;;  %s2161_s29 = smov [#allocation2]  }
  0x1b   : > { %1797 = vmatpush3.bf16.msra.mxu1 %v1796_v38  ;;  %v396_v60 = vld [vmem:[%s3123_s1 + $0x1d0] sm:$0xff]  ;;  %v397_v61 = vld [vmem:[%s3123_s1 + $0x1d8] sm:$0xff]  ;;  %v1804_v63 = vpack.c.bf16 %v379_v57, %v378_v55  ;;  %v1774_v0 = vpack.c.bf16 %v365_v59, %v364_v58  ;;  %v366_v6 = vld [vmem:[%s3123_s1 + $0xe0] sm:$0xff] }
  0x1c   : > { %1799 = vmatprep.subr.bf16.mxu1 %v1798_v43  ;;  %v348_v1 = vld [vmem:[%s3123_s1 + $0x50] sm:$0xff]  ;;  %v349_v2 = vld [vmem:[%s3123_s1 + $0x58] sm:$0xff]  ;;  %v1806_v4 = vpack.c.bf16 %v397_v61, %v396_v60  ;;  %v367_v7 = vld [vmem:[%s3123_s1 + $0xe8] sm:$0xff]  ;;  %v2160_v60 = vmov 0.0   ;;  %p2096_p12 = pnand %p2095_p11, %p2250_p5 }
  0x1d   : > { %1769 = vmatpush3.bf16.msra.mxu0 %v1768_v48  ;;  %v380_v3 = vld [vmem:[%s3123_s1 + $0x150] sm:$0xff]  ;;  %v381_v5 = vld [vmem:[%s3123_s1 + $0x158] sm:$0xff]  ;;  %v398_v8 = vld [vmem:[%s3123_s1 + $0x1e0] sm:$0xff]  ;;  %v1776_v10 = vpack.c.bf16 %v349_v2, %v348_v1  ;;  %v1778_v14 = vpack.c.bf16 %v367_v7, %v366_v6 }
  0x1e   : > { %1771 = vmatprep.subr.bf16.mxu0 %v1770_v52  ;;  %v399_v9 = vld [vmem:[%s3123_s1 + $0x1e8] sm:$0xff]  ;;  %v350_v11 = vld [vmem:[%s3123_s1 + $0x60] sm:$0xff]  ;;  %v1808_v13 = vpack.c.bf16 %v381_v5, %v380_v3  ;;  %v368_v19 = vld [vmem:[%s3123_s1 + $0xf0] sm:$0xff]  ;;  %p2097_p13 = pneg %p2096_p12 }
  0x1f   : > { %1801 = vmatpush3.bf16.msra.mxu1 %v1800_v51  ;;  %v332_v12 = vld [vmem:[%s2411_s26 + $0x8] sm:$0xff]  ;;  %v382_v16 = vld [vmem:[%s3123_s1 + $0x160] sm:$0xff]  ;;  %v1810_v18 = vpack.c.bf16 %v399_v9, %v398_v8  ;;  %v369_v20 = vld [vmem:[%s3123_s1 + $0xf8] sm:$0xff] }
  0x20   : > { %1803 = vmatprep.subr.bf16.mxu1 %v1802_v56  ;;  %v351_v15 = vld [vmem:[%s3123_s1 + $0x68] sm:$0xff]  ;;  %511 = vmatprep.mubr.f32.mxu0 %v332_v12  ;;  %v334_v21 = vld [vmem:[%s2411_s26 + $0x18] sm:$0xff]  ;;  %v400_v22 = vld [vmem:[%s3123_s1 + $0x1f0] sm:$0xff]  ;;  %v1782_v26 = vpack.c.bf16 %v369_v20, %v368_v19 }
  0x21   : > { %1773 = vmatpush3.bf16.msra.mxu0 %v1772_v62  ;;  %v383_v17 = vld [vmem:[%s3123_s1 + $0x168] sm:$0xff]  ;;  %v401_v23 = vld [vmem:[%s3123_s1 + $0x1f8] sm:$0xff]  ;;  %581 = vmatprep.mubr.f32.mxu1 %v334_v21  ;;  %v1780_v24 = vpack.c.bf16 %v351_v15, %v350_v11  ;;  %v352_v27 = vld [vmem:[%s3123_s1 + $0x70] sm:$0xff] }
  0x22   : > { %1775 = vmatprep.subr.bf16.mxu0 %v1774_v0  ;;  %v1812_v25 = vpack.c.bf16 %v383_v17, %v382_v16  ;;  %v353_v28 = vld [vmem:[%s3123_s1 + $0x78] sm:$0xff]  ;;  %v384_v29 = vld [vmem:[%s3123_s1 + $0x170] sm:$0xff]  ;;  %v1814_v30 = vpack.c.bf16 %v401_v23, %v400_v22  ;;  %v418_v32 = vld [vmem:[%s3123_s1 + $0x280] sm:$0xff] }
  0x23   : > { %1805 = vmatpush3.bf16.msra.mxu1 %v1804_v63  ;;  %v385_v31 = vld [vmem:[%s3123_s1 + $0x178] sm:$0xff]  ;;  %v419_v33 = vld [vmem:[%s3123_s1 + $0x288] sm:$0xff]  ;;  %v1784_v34 = vpack.c.bf16 %v353_v28, %v352_v27  ;;  %v402_v37 = vld [vmem:[%s3123_s1 + $0x200] sm:$0xff] }
  0x24   : > { %1807 = vmatprep.subr.bf16.mxu1 %v1806_v4  ;;  %v1816_v35 = vpack.c.bf16 %v385_v31, %v384_v29  ;;  %v1818_v36 = vpack.c.bf16 %v419_v33, %v418_v32  ;;  %v403_v38 = vld [vmem:[%s3123_s1 + $0x208] sm:$0xff]  ;;  %v420_v39 = vld [vmem:[%s3123_s1 + $0x290] sm:$0xff]  ;;  %v421_v40 = vld [vmem:[%s3123_s1 + $0x298] sm:$0xff] }
  0x25   : > { %1777 = vmatpush3.bf16.msra.mxu0 %v1776_v10  ;;  %v331_v41 = vld [vmem:[%s2411_s26] sm:$0xff]  ;;  %v1820_v42 = vpack.c.bf16 %v403_v38, %v402_v37  ;;  %v333_v43 = vld [vmem:[%s2411_s26 + $0x10] sm:$0xff]  ;;  %v1822_v45 = vpack.c.bf16 %v421_v40, %v420_v39  ;;  %v405_v46 = vld [vmem:[%s3123_s1 + $0x218] sm:$0xff] }
  0x26   : > { %1779 = vmatprep.subr.bf16.mxu0 %v1778_v14  ;;  %v404_v44 = vld [vmem:[%s3123_s1 + $0x210] sm:$0xff]  ;;  %v422_v47 = vld [vmem:[%s3123_s1 + $0x2a0] sm:$0xff]  ;;  %v423_v48 = vld [vmem:[%s3123_s1 + $0x2a8] sm:$0xff] }
  0x27   : > { %1809 = vmatpush3.bf16.msra.mxu1 %v1808_v13  ;;  %v336_v49 = vld [vmem:[%s2411_s26 + $0x28] sm:$0xff]  ;;  %v434_v51 = vld [vmem:[%s3123_s1 + $0x300] sm:$0xff]  ;;  %v1824_v54 = vpack.c.bf16 %v405_v46, %v404_v44  ;;  %v1826_v55 = vpack.c.bf16 %v423_v48, %v422_v47  ;;  %v424_v58 = vld [vmem:[%s3123_s1 + $0x2b0] sm:$0xff] }
  0x28   : > { %1811 = vmatprep.subr.bf16.mxu1 %v1810_v18  ;;  %v435_v52 = vld [vmem:[%s3123_s1 + $0x308] sm:$0xff]  ;;  %v406_v56 = vld [vmem:[%s3123_s1 + $0x220] sm:$0xff]  ;;  %v425_v59 = vld [vmem:[%s3123_s1 + $0x2b8] sm:$0xff] }
  0x29   : > { %1781 = vmatpush3.bf16.msra.mxu0 %v1780_v24  ;;  %v1851_v53 = vpack.c.bf16 %v435_v52, %v434_v51  ;;  %v407_v57 = vld [vmem:[%s3123_s1 + $0x228] sm:$0xff]  ;;  %v337_v61 = vld [vmem:[%s2411_s26 + $0x30] sm:$0xff]  ;;  %v1830_v63 = vpack.c.bf16 %v425_v59, %v424_v58  ;;  %v409_v1 = vld [vmem:[%s3123_s1 + $0x238] sm:$0xff] }
  0x2a   : > { %1783 = vmatprep.subr.bf16.mxu0 %v1782_v26  ;;  %v1828_v62 = vpack.c.bf16 %v407_v57, %v406_v56  ;;  %v408_v0 = vld [vmem:[%s3123_s1 + $0x230] sm:$0xff]  ;;  %v426_v2 = vld [vmem:[%s3123_s1 + $0x2c0] sm:$0xff]  ;;  %v427_v3 = vld [vmem:[%s3123_s1 + $0x2c8] sm:$0xff] }
  0x2b   : > { %1813 = vmatpush3.bf16.msra.mxu1 %v1812_v25  ;;  %v1832_v4 = vpack.c.bf16 %v409_v1, %v408_v0  ;;  %v1834_v5 = vpack.c.bf16 %v427_v3, %v426_v2  ;;  %v410_v6 = vld [vmem:[%s3123_s1 + $0x240] sm:$0xff]  ;;  %v411_v7 = vld [vmem:[%s3123_s1 + $0x248] sm:$0xff]  ;;  %v428_v8 = vld [vmem:[%s3123_s1 + $0x2d0] sm:$0xff] }
  0x2c   : > { %1815 = vmatprep.subr.bf16.mxu1 %v1814_v30  ;;  %v429_v9 = vld [vmem:[%s3123_s1 + $0x2d8] sm:$0xff]  ;;  %v1836_v10 = vpack.c.bf16 %v411_v7, %v410_v6  ;;  %v412_v12 = vld [vmem:[%s3123_s1 + $0x250] sm:$0xff]  ;;  %v430_v14 = vld [vmem:[%s3123_s1 + $0x2e0] sm:$0xff] }
  0x2d   : > { %1785 = vmatpush3.bf16.msra.mxu0 %v1784_v34  ;;  %v1838_v11 = vpack.c.bf16 %v429_v9, %v428_v8  ;;  %v413_v13 = vld [vmem:[%s3123_s1 + $0x258] sm:$0xff]  ;;  %v431_v15 = vld [vmem:[%s3123_s1 + $0x2e8] sm:$0xff]  ;;  %v414_v18 = vld [vmem:[%s3123_s1 + $0x260] sm:$0xff] }
  0x2e   : > { %1819 = vmatprep.subr.bf16.mxu0 %v1818_v36  ;;  %v1840_v16 = vpack.c.bf16 %v413_v13, %v412_v12  ;;  %v1842_v17 = vpack.c.bf16 %v431_v15, %v430_v14  ;;  %v415_v19 = vld [vmem:[%s3123_s1 + $0x268] sm:$0xff]  ;;  %v432_v20 = vld [vmem:[%s3123_s1 + $0x2f0] sm:$0xff]  ;;  %v433_v21 = vld [vmem:[%s3123_s1 + $0x2f8] sm:$0xff] }
  0x2f   : > { %1817 = vmatpush3.bf16.msra.mxu1 %v1816_v35  ;;  %v1844_v22 = vpack.c.bf16 %v415_v19, %v414_v18  ;;  %v1846_v23 = vpack.c.bf16 %v433_v21, %v432_v20  ;;  %v416_v24 = vld [vmem:[%s3123_s1 + $0x270] sm:$0xff]  ;;  %v417_v25 = vld [vmem:[%s3123_s1 + $0x278] sm:$0xff]  ;;  %v335_v27 = vld [vmem:[%s2411_s26 + $0x20] sm:$0xff]  ;;  %s2098_s26 = sshll.u32 %s2161_s29, 4  ;;  %s2099_s26 = int_to_ptr.vmem [resolvable:$false] %s2098_s26 }
  0x30   : > { %1850 = vmatprep.subr.bf16.mxu1 %v2158_v50  ;;  %512 = vmatmul.mubr.f32.vlgmr.msra.gmra.mrb[0].mxu0 %v331_v41  ;;  %v1848_v26 = vpack.c.bf16 %v417_v25, %v416_v24  ;;  %v728_v28 = vld [vmem:[%s3125_s3] sm:$0xff]  ;;  %v729_v29 = vld [vmem:[%s3125_s3 + $0x8] sm:$0xff]  ;;  %v730_v30 = vld [vmem:[%s3125_s3 + $0x10] sm:$0xff]  ;;  %s2100_s24 = scalar_lea.vmem %s2099_s26, 1792  ;;  %p2101_p0 = scmp.lt.s32.totalorder %s3077_s14, %s2099_s26 }
  0x31   : > { %1821 = vmatpush3.bf16.msra.mxu0 %v1820_v42  ;;  %651 = vmatprep.mubr.f32.mxu0 %v336_v49  ;;  %v1854_v31 = vpack.c.bf16 %v729_v29, %v728_v28  ;;  %v731_v32 = vld [vmem:[%s3125_s3 + $0x18] sm:$0xff]  ;;  %v732_v34 = vld [vmem:[%s3125_s3 + $0x20] sm:$0xff]  ;;  %v733_v35 = vld [vmem:[%s3125_s3 + $0x28] sm:$0xff]  ;;  %p2102_p1 = scmp.lt.s32.totalorder %s2100_s24, %s2094_s23 }
  0x32   : > { %582 = vmatmul.mubr.f32.vlgmr.msra.gmra.mrb[0].mxu1 %v333_v43  ;;  %1823 = vmatprep.subr.bf16.mxu0 %v1822_v45  ;;  %v1857_v33 = vpack.c.bf16 %v731_v32, %v730_v30  ;;  %v1860_v36 = vpack.c.bf16 %v733_v35, %v732_v34  ;;  %v734_v37 = vld [vmem:[%s3125_s3 + $0x30] sm:$0xff]  ;;  %v735_v38 = vld [vmem:[%s3125_s3 + $0x38] sm:$0xff]  ;;  %v736_v40 = vld [vmem:[%s3125_s3 + $0x40] sm:$0xff] }
  0x33   : > { %1852 = vmatpush3.bf16.msra.mxu1 %v1851_v53  ;;  %1646 = vmatprep.mubr.msk.f32.mxu1 %vm2159_vm0, %v2160_v60  ;;  %v1863_v39 = vpack.c.bf16 %v735_v38, %v734_v37  ;;  %v737_v41 = vld [vmem:[%s3125_s3 + $0x48] sm:$0xff]  ;;  %v738_v43 = vld [vmem:[%s3125_s3 + $0x50] sm:$0xff]  ;;  %v739_v44 = vld [vmem:[%s3125_s3 + $0x58] sm:$0xff]  ;;  %p2103_p2 = por %p2102_p1, %p2101_p0 }
  0x34   : > { %1853 = vmatprep.subr.bf16.mxu1 %v2158_v50  ;;  %v1866_v42 = vpack.c.bf16 %v737_v41, %v736_v40  ;;  %v1869_v45 = vpack.c.bf16 %v739_v44, %v738_v43  ;;  %v740_v46 = vld [vmem:[%s3125_s3 + $0x60] sm:$0xff]  ;;  %v741_v47 = vld [vmem:[%s3125_s3 + $0x68] sm:$0xff]  ;;  %v742_v49 = vld [vmem:[%s3125_s3 + $0x70] sm:$0xff] }
  0x35   : > { %1825 = vmatpush3.bf16.msra.mxu0 %v1824_v54  ;;  %v1872_v48 = vpack.c.bf16 %v741_v47, %v740_v46  ;;  %v743_v51 = vld [vmem:[%s3125_s3 + $0x78] sm:$0xff]  ;;  %v822_v53 = vld [vmem:[%s3127_s5] sm:$0xff]  ;;  %v823_v54 = vld [vmem:[%s3127_s5 + $0x8] sm:$0xff]  ;;  %p2104_p3 = pnand %p2103_p2, %p2097_p13 }
  0x36   : > { %1827 = vmatprep.subr.bf16.mxu0 %v1826_v55  ;;  %1647 = vmatmul.mubr.msk.f32.vlgmr.msra.gmra.mrb[2].mxu1 %vm443_vm1, %v337_v61  ;;  %v1875_v52 = vpack.c.bf16 %v743_v51, %v742_v49  ;;  %v824_v55 = vld [vmem:[%s3127_s5 + $0x10] sm:$0xff]  ;;  %v1878_v56 = vpack.c.bf16 %v823_v54, %v822_v53  ;;  %v825_v57 = vld [vmem:[%s3127_s5 + $0x18] sm:$0xff]  ;;  %v826_v59 = vld [vmem:[%s3127_s5 + $0x20] sm:$0xff] }
  0x37   : > { %1681 = vmatprep.mubr.msk.f32.mxu1 %vm2159_vm0, %v2160_v60  ;;  %1855 = vmatpush3.bf16.msra.mxu1 %v1854_v31  ;;  %v1881_v58 = vpack.c.bf16 %v825_v57, %v824_v55  ;;  %v827_v61 = vld [vmem:[%s3127_s5 + $0x28] sm:$0xff]  ;;  %v829_v0 = vld [vmem:[%s3127_s5 + $0x38] sm:$0xff]  ;;  %v830_v2 = vld [vmem:[%s3127_s5 + $0x40] sm:$0xff] }
  0x38   : > { %1856 = vmatprep.subr.bf16.mxu1 %v2158_v50  ;;  %v831_v3 = vld [vmem:[%s3127_s5 + $0x48] sm:$0xff]  ;;  %v833_v6 = vld [vmem:[%s3127_s5 + $0x58] sm:$0xff]  ;;  %v834_v8 = vld [vmem:[%s3127_s5 + $0x60] sm:$0xff] }
  0x39   : > { %1829 = vmatpush3.bf16.msra.mxu0 %v1828_v62  ;;  %v1884_v62 = vpack.c.bf16 %v827_v61, %v826_v59  ;;  %v835_v9 = vld [vmem:[%s3127_s5 + $0x68] sm:$0xff]  ;;  %v1476_v12 = vld [vmem:[%s3124_s2] ss:$0 sm:$0xff]  ;;  %v836_v28 = vld [vmem:[%s3127_s5 + $0x70] sm:$0xff] }
  0x3a   : > { %1831 = vmatprep.subr.bf16.mxu0 %v1830_v63  ;;  %v828_v63 = vld [vmem:[%s3127_s5 + $0x30] sm:$0xff]  ;;  %v837_v29 = vld [vmem:[%s3127_s5 + $0x78] sm:$0xff]  ;;  %v917_v31 = vld [vmem:[%s3129_s7 + $0x8] sm:$0xff] }
  0x3b   : > { %1858 = vmatpush3.bf16.msra.mxu1 %v1857_v33  ;;  %v1887_v1 = vpack.c.bf16 %v829_v0, %v828_v63  ;;  %v1899_v30 = vpack.c.bf16 %v837_v29, %v836_v28  ;;  %v924_v32 = vld [vmem:[%s3129_s7 + $0x40] sm:$0xff]  ;;  %v919_v33 = vld [vmem:[%s3129_s7 + $0x18] sm:$0xff]  ;;  %v926_v35 = vld [vmem:[%s3129_s7 + $0x50] sm:$0xff] }
  0x3c   : > { %1859 = vmatprep.subr.bf16.mxu1 %v2158_v50  ;;  %v1901_v34 = vpack.c.bf16 %v924_v32, %v917_v31  ;;  %v923_v37 = vld [vmem:[%s3129_s7 + $0x38] sm:$0xff]  ;;  %v1933_v38 = vpack.c.bf16 %v926_v35, %v919_v33  ;;  %v938_v41 = vld [vmem:[%s3129_s7 + $0xb0] sm:$0xff]  ;;  %v937_v44 = vld [vmem:[%s3129_s7 + $0xa8] sm:$0xff] }
  0x3d   : > { %1833 = vmatpush3.bf16.msra.mxu0 %v1832_v4  ;;  %v1890_v4 = vpack.c.bf16 %v831_v3, %v830_v2  ;;  %v931_v40 = vld [vmem:[%s3129_s7 + $0x78] sm:$0xff]  ;;  %v930_v43 = vld [vmem:[%s3129_s7 + $0x70] sm:$0xff]  ;;  %v945_v46 = vld [vmem:[%s3129_s7 + $0xe8] sm:$0xff] }
  0x3e   : > { %1835 = vmatprep.subr.bf16.mxu0 %v1834_v5  ;;  %v832_v5 = vld [vmem:[%s3127_s5 + $0x50] sm:$0xff]  ;;  %v952_v47 = vld [vmem:[%s3129_s7 + $0x120] sm:$0xff]  ;;  %v951_v51 = vld [vmem:[%s3129_s7 + $0x118] sm:$0xff] }
  0x3f   : > { %1861 = vmatpush3.bf16.msra.mxu1 %v1860_v36  ;;  %v1893_v7 = vpack.c.bf16 %v833_v6, %v832_v5  ;;  %v916_v36 = vld [vmem:[%s3129_s7] sm:$0xff]  ;;  %v959_v53 = vld [vmem:[%s3129_s7 + $0x158] sm:$0xff]  ;;  %v966_v54 = vld [vmem:[%s3129_s7 + $0x190] sm:$0xff] }
  0x40   : > { %1862 = vmatprep.subr.bf16.mxu1 %v2158_v50  ;;  %v944_v49 = vld [vmem:[%s3129_s7 + $0xe0] sm:$0xff]  ;;  %v1913_v55 = vpack.c.bf16 %v966_v54, %v959_v53  ;;  %v965_v57 = vld [vmem:[%s3129_s7 + $0x188] sm:$0xff]  ;;  %v979_v0 = vld [vmem:[%s3129_s7 + $0x1f8] sm:$0xff] }
  0x41   : > { %1837 = vmatpush3.bf16.msra.mxu0 %v1836_v10  ;;  %v1896_v10 = vpack.c.bf16 %v835_v9, %v834_v8  ;;  %v973_v59 = vld [vmem:[%s3129_s7 + $0x1c8] sm:$0xff]  ;;  %v980_v61 = vld [vmem:[%s3129_s7 + $0x200] sm:$0xff]  ;;  %v987_v2 = vld [vmem:[%s3129_s7 + $0x238] sm:$0xff] }
  0x42   : > { %1839 = vmatprep.subr.bf16.mxu0 %v1838_v11  ;;  %v972_v63 = vld [vmem:[%s3129_s7 + $0x1c0] sm:$0xff]  ;;  %v994_v3 = vld [vmem:[%s3129_s7 + $0x270] sm:$0xff]  ;;  %v993_v6 = vld [vmem:[%s3129_s7 + $0x268] sm:$0xff] }
  0x43   : > { %1864 = vmatpush3.bf16.msra.mxu1 %v1863_v39  ;;  %v1903_v39 = vpack.c.bf16 %v923_v37, %v916_v36  ;;  %v986_v5 = vld [vmem:[%s3129_s7 + $0x230] sm:$0xff]  ;;  %v1001_v8 = vld [vmem:[%s3129_s7 + $0x2a8] sm:$0xff]  ;;  %v1008_v9 = vld [vmem:[%s3129_s7 + $0x2e0] sm:$0xff] }
  0x44   : > { %1865 = vmatprep.subr.bf16.mxu1 %v2158_v50  ;;  %v954_v28 = vld [vmem:[%s3129_s7 + $0x130] sm:$0xff]  ;;  %v953_v32 = vld [vmem:[%s3129_s7 + $0x128] sm:$0xff]  ;;  %v960_v37 = vld [vmem:[%s3129_s7 + $0x160] sm:$0xff] }
  0x45   : > { %1841 = vmatpush3.bf16.msra.mxu0 %v1840_v16  ;;  %v946_v31 = vld [vmem:[%s3129_s7 + $0xf0] sm:$0xff]  ;;  %v961_v33 = vld [vmem:[%s3129_s7 + $0x168] sm:$0xff] }
  0x46   : > { %1843 = vmatprep.subr.bf16.mxu0 %v1842_v17  ;;  %v1943_v35 = vpack.c.bf16 %v953_v32, %v946_v31  ;;  %v1010_v53 = vld [vmem:[%s3129_s7 + $0x2f0] sm:$0xff] }
  0x47   : > { %1867 = vmatpush3.bf16.msra.mxu1 %v1866_v42  ;;  %v1905_v42 = vpack.c.bf16 %v938_v41, %v931_v40  ;;  %v982_v40 = vld [vmem:[%s3129_s7 + $0x210] sm:$0xff] }
  0x48   : > { %1868 = vmatprep.subr.bf16.mxu1 %v2158_v50 }
  0x49   : > { %1845 = vmatpush3.bf16.msra.mxu0 %v1844_v22 }
  0x4a   : > { %1847 = vmatprep.subr.bf16.mxu0 %v1846_v23 }
  0x4b   : > { %1870 = vmatpush3.bf16.msra.mxu1 %v1869_v45  ;;  %v1907_v45 = vpack.c.bf16 %v937_v44, %v930_v43  ;;  %v974_v43 = vld [vmem:[%s3129_s7 + $0x1d0] sm:$0xff]  ;;  %v981_v44 = vld [vmem:[%s3129_s7 + $0x208] sm:$0xff] }
  0x4c   : > { %1871 = vmatprep.subr.bf16.mxu1 %v2158_v50 }
  0x4d   : > { %1849 = vmatpush3.bf16.msra.mxu0 %v1848_v26 }
  0x4e   : > { %1877 = vmatprep.subr.bf16.mxu0 %v2158_v50 }
  0x4f   : > { %1873 = vmatpush3.bf16.msra.mxu1 %v1872_v48  ;;  %v1909_v48 = vpack.c.bf16 %v952_v47, %v945_v46  ;;  %v996_v46 = vld [vmem:[%s3129_s7 + $0x280] sm:$0xff]  ;;  %v1951_v47 = vpack.c.bf16 %v981_v44, %v974_v43  ;;  %v969_v44 = vld [vmem:[%s3129_s7 + $0x1a8] sm:$0xff] }
  0x50   : > { %652 = vmatmul.mubr.f32.vlgmr.msra.gmra.mrb[2].mxu0 %v335_v27  ;;  %1874 = vmatprep.subr.bf16.mxu1 %v2158_v50 }
  0x51   : > { %1716 = vmatprep.mubr.msk.f32.mxu0 %vm2159_vm0, %v2160_v60  ;;  %1879 = vmatpush3.bf16.msra.mxu0 %v1878_v56  ;;  %v958_v56 = vld [vmem:[%s3129_s7 + $0x150] sm:$0xff] }
  0x52   : > { %1880 = vmatprep.subr.bf16.mxu0 %v2158_v50 }
  0x53   : > { %1876 = vmatpush3.bf16.msra.mxu1 %v1875_v52  ;;  %v1911_v52 = vpack.c.bf16 %v951_v51, %v944_v49  ;;  %v988_v49 = vld [vmem:[%s3129_s7 + $0x240] sm:$0xff]  ;;  %v995_v51 = vld [vmem:[%s3129_s7 + $0x278] sm:$0xff] }
  0x54   : > { %1902 = vmatprep.subr.bf16.mxu1 %v1901_v34  ;;  %v968_v34 = vld [vmem:[%s3129_s7 + $0x1a0] sm:$0xff]  ;;  %v1955_v54 = vpack.c.bf16 %v995_v51, %v988_v49 }
  0x55   : > { %1882 = vmatpush3.bf16.msra.mxu0 %v1881_v58  ;;  %v1915_v58 = vpack.c.bf16 %v965_v57, %v958_v56  ;;  %v1945_v36 = vpack.c.bf16 %v968_v34, %v961_v33  ;;  %v1002_v56 = vld [vmem:[%s3129_s7 + $0x2b0] sm:$0xff]  ;;  %v1009_v57 = vld [vmem:[%s3129_s7 + $0x2e8] sm:$0xff]  ;;  %v948_v33 = vld [vmem:[%s3129_s7 + $0x100] sm:$0xff] }
  0x56   : > { %1883 = vmatprep.subr.bf16.mxu0 %v2158_v50  ;;  %v976_v51 = vld [vmem:[%s3129_s7 + $0x1e0] sm:$0xff] }
  0x59   : > { %1885 = vmatpush3.bf16.msra.mxu0 %v1884_v62  ;;  %v1917_v62 = vpack.c.bf16 %v980_v61, %v973_v59  ;;  %v1015_v59 = vld [vmem:[%s3129_s7 + $0x318] sm:$0xff]  ;;  %v1022_v61 = vld [vmem:[%s3129_s7 + $0x350] sm:$0xff] }
  0x5a   : > { %1886 = vmatprep.subr.bf16.mxu0 %v2158_v50 }
  0x5d   : > { %1888 = vmatpush3.bf16.msra.mxu0 %v1887_v1  ;;  %v1919_v1 = vpack.c.bf16 %v979_v0, %v972_v63  ;;  %v1929_v63 = vpack.c.bf16 %v1022_v61, %v1015_v59  ;;  %v1024_v0 = vld [vmem:[%s3129_s7 + $0x360] sm:$0xff]  ;;  %v990_v61 = vld [vmem:[%s3129_s7 + $0x250] sm:$0xff] }
  0x5e   : > { %1889 = vmatprep.subr.bf16.mxu0 %v2158_v50 }
  0x61   : > { %1891 = vmatpush3.bf16.msra.mxu0 %v1890_v4  ;;  %v1921_v4 = vpack.c.bf16 %v994_v3, %v987_v2  ;;  %v1021_v2 = vld [vmem:[%s3129_s7 + $0x348] sm:$0xff] }
  0x62   : > { %1892 = vmatprep.subr.bf16.mxu0 %v2158_v50 }
  0x65   : > { %1894 = vmatpush3.bf16.msra.mxu0 %v1893_v7  ;;  %v1923_v7 = vpack.c.bf16 %v993_v6, %v986_v5  ;;  %v1016_v5 = vld [vmem:[%s3129_s7 + $0x320] sm:$0xff]  ;;  %v1023_v6 = vld [vmem:[%s3129_s7 + $0x358] sm:$0xff] }
  0x66   : > { %1895 = vmatprep.subr.bf16.mxu0 %v2158_v50 }
  0x69   : > { %1897 = vmatpush3.bf16.msra.mxu0 %v1896_v10  ;;  %v1925_v10 = vpack.c.bf16 %v1008_v9, %v1001_v8  ;;  %v921_v8 = vld [vmem:[%s3129_s7 + $0x28] sm:$0xff]  ;;  %v928_v9 = vld [vmem:[%s3129_s7 + $0x60] sm:$0xff] }
  0x6a   : > { %1898 = vmatprep.subr.bf16.mxu0 %v2158_v50 }
  0x6d   : > { %1900 = vmatpush3.bf16.msra.mxu0 %v1899_v30 }
  0x6e   : > { %1934 = vmatprep.subr.bf16.mxu0 %v1933_v38  ;;  %v967_v38 = vld [vmem:[%s3129_s7 + $0x198] sm:$0xff] }
  0x6f   : > { %v1947_v41 = vpack.c.bf16 %v967_v38, %v960_v37  ;;  %v957_v37 = vld [vmem:[%s3129_s7 + $0x148] sm:$0xff]  ;;  %v963_v38 = vld [vmem:[%s3129_s7 + $0x178] sm:$0xff] }
 0x103   : > { %v1515_v11 = vpop.f32.mrb[0].mxu0 }
 0x104   : > { %v1516_v13 = vpop.f32.mrb[1].mxu0 }
 0x105   : > { %v1550_v14 = vpop.f32.mrb[0].mxu1  ;;  %v1517_v15 = vadd.f32 %v1516_v13, %v1515_v11  ;;  %v1000_v11 = vld [vmem:[%s3129_s7 + $0x2a0] sm:$0xff] }
 0x106   : > { %v1551_v16 = vpop.f32.mrb[1].mxu1 }
 0x107   : > { %v1552_v17 = vadd.f32 %v1551_v16, %v1550_v14  ;;  %v514_v18 = vadd.f32 %v1517_v15, %v1476_v12  ;;  %v1007_v12 = vld [vmem:[%s3129_s7 + $0x2d8] sm:$0xff]  ;;  %v1478_v14 = vld [vmem:[%s3126_s4] ss:$0 sm:$0xff]  ;;  %v918_v15 = vld [vmem:[%s3129_s7 + $0x10] sm:$0xff] }
 0x108   : > { %v1927_v13 = vpack.c.bf16 %v1007_v12, %v1000_v11  ;;  %v925_v16 = vld [vmem:[%s3129_s7 + $0x48] sm:$0xff]  ;;  %v1479_v11 = vld [vmem:[%s3128_s6] ss:$0 sm:$0xff] }
 0x109   : > { %v584_v19 = vadd.f32 %v1552_v17, %v514_v18  ;;  %v723_v20 = vpop.f32.mrb[2].mxu1  ;;  %v933_v18 = vld [vmem:[%s3129_s7 + $0x88] sm:$0xff]  ;;  %v920_v12 = vld [vmem:[%s3129_s7 + $0x20] sm:$0xff] }
 0x10a   : > { %v1648_v21 = vpop.f32.mrb[3].mxu1 }
 0x123   : > { %v1585_v22 = vpop.f32.mrb[2].mxu0 }
 0x124   : > { %v1586_v23 = vpop.f32.mrb[3].mxu0 }
 0x125   : > { %v1587_v24 = vadd.f32 %v1586_v23, %v1585_v22  ;;  %v1935_v22 = vpack.c.bf16 %v925_v16, %v918_v15  ;;  %v929_v15 = vld [vmem:[%s3129_s7 + $0x68] sm:$0xff] }
 0x127   : > { %v654_v25 = vadd.f32 %v1587_v24, %v584_v19  ;;  %v940_v19 = vld [vmem:[%s3129_s7 + $0xc0] sm:$0xff] }
 0x128   : > { %v1937_v24 = vpack.c.bf16 %v940_v19, %v933_v18  ;;  %v942_v18 = vld [vmem:[%s3129_s7 + $0xd0] sm:$0xff] }
 0x129   : > { %v724_v26 = vadd.f32 %v723_v20, %v654_v25  ;;  %v932_v25 = vld [vmem:[%s3129_s7 + $0x80] sm:$0xff] }
 0x12b   : > { %v727_v27 = vmax.f32 %v724_v26, 0.0  ;;  %v939_v26 = vld [vmem:[%s3129_s7 + $0xb8] sm:$0xff] }
 0x12c   : > { %v1939_v29 = vpack.c.bf16 %v939_v26, %v932_v25  ;;  %v941_v26 = vld [vmem:[%s3129_s7 + $0xc8] sm:$0xff] }
 0x12d   : > { %1682 = vmatmul.mubr.f32.vlgmr.msra.gmra.mrb[4].mxu1 %v727_v27  ;;  %v947_v27 = vld [vmem:[%s3129_s7 + $0xf8] sm:$0xff] }
 0x12e   : > { %1129 = vmatprep.mubr.f32.mxu1 %v2160_v60  ;;  %1904 = vmatpush1.bf16.msra.mxu1 %v1903_v39  ;;  %v1941_v30 = vpack.c.bf16 %v954_v28, %v947_v27  ;;  %v975_v39 = vld [vmem:[%s3129_s7 + $0x1d8] sm:$0xff]  ;;  %v936_v27 = vld [vmem:[%s3129_s7 + $0xa0] sm:$0xff] }
 0x12f   : > { %1906 = vmatprep.subr.bf16.mxu1 %v1905_v42  ;;  %v1949_v42 = vpack.c.bf16 %v982_v40, %v975_v39  ;;  %v943_v28 = vld [vmem:[%s3129_s7 + $0xd8] sm:$0xff]  ;;  %v970_v39 = vld [vmem:[%s3129_s7 + $0x1b0] sm:$0xff] }
 0x130   : > { %v2001_v32 = vpack.c.bf16 %v943_v28, %v936_v27  ;;  %v1977_v43 = vpack.c.bf16 %v970_v39, %v963_v38  ;;  %v1028_v27 = vld [vmem:[%s3130_s8] sm:$0x7f] }
 0x132   : > { %1908 = vmatpush1.bf16.msra.mxu1 %v1907_v45  ;;  %v989_v45 = vld [vmem:[%s3129_s7 + $0x248] sm:$0xff] }
 0x133   : > { %1910 = vmatprep.subr.bf16.mxu1 %v1909_v48  ;;  %v1953_v48 = vpack.c.bf16 %v996_v46, %v989_v45  ;;  %v971_v45 = vld [vmem:[%s3129_s7 + $0x1b8] sm:$0xff]  ;;  %v977_v46 = vld [vmem:[%s3129_s7 + $0x1e8] sm:$0xff] }
 0x136   : > { %1912 = vmatpush1.bf16.msra.mxu1 %v1911_v52  ;;  %v1003_v52 = vld [vmem:[%s3129_s7 + $0x2b8] sm:$0xff] }
 0x137   : > { %1914 = vmatprep.subr.bf16.mxu1 %v1913_v55  ;;  %v1957_v55 = vpack.c.bf16 %v1010_v53, %v1003_v52  ;;  %v983_v53 = vld [vmem:[%s3129_s7 + $0x218] sm:$0xff] }
 0x13a   : > { %1916 = vmatpush1.bf16.msra.mxu1 %v1915_v58  ;;  %v1959_v58 = vpack.c.bf16 %v1009_v57, %v1002_v56  ;;  %v991_v56 = vld [vmem:[%s3129_s7 + $0x258] sm:$0xff]  ;;  %v998_v57 = vld [vmem:[%s3129_s7 + $0x290] sm:$0xff] }
 0x13b   : > { %1918 = vmatprep.subr.bf16.mxu1 %v1917_v62  ;;  %v1017_v62 = vld [vmem:[%s3129_s7 + $0x328] sm:$0xff] }
 0x13c   : > { %v1961_v3 = vpack.c.bf16 %v1024_v0, %v1017_v62  ;;  %v1985_v62 = vpack.c.bf16 %v998_v57, %v991_v56  ;;  %v992_v0 = vld [vmem:[%s3129_s7 + $0x260] sm:$0xff] }
 0x13e   : > { %1920 = vmatpush1.bf16.msra.mxu1 %v1919_v1  ;;  %v1014_v1 = vld [vmem:[%s3129_s7 + $0x310] sm:$0xff] }
 0x13f   : > { %1922 = vmatprep.subr.bf16.mxu1 %v1921_v4  ;;  %v1931_v4 = vpack.c.bf16 %v1021_v2, %v1014_v1  ;;  %v999_v1 = vld [vmem:[%s3129_s7 + $0x298] sm:$0xff]  ;;  %v1005_v2 = vld [vmem:[%s3129_s7 + $0x2c8] sm:$0xff] }
 0x142   : > { %1924 = vmatpush1.bf16.msra.mxu1 %v1923_v7  ;;  %v1963_v7 = vpack.c.bf16 %v1023_v6, %v1016_v5  ;;  %v2013_v5 = vpack.c.bf16 %v999_v1, %v992_v0  ;;  %v1004_v6 = vld [vmem:[%s3129_s7 + $0x2c0] sm:$0xff] }
 0x143   : > { %1926 = vmatprep.subr.bf16.mxu1 %v1925_v10  ;;  %v1965_v10 = vpack.c.bf16 %v928_v9, %v921_v8  ;;  %v1011_v8 = vld [vmem:[%s3129_s7 + $0x2f8] sm:$0xff]  ;;  %v1006_v9 = vld [vmem:[%s3129_s7 + $0x2d0] sm:$0xff] }
 0x146   : > { %1928 = vmatpush1.bf16.msra.mxu1 %v1927_v13  ;;  %v927_v13 = vld [vmem:[%s3129_s7 + $0x58] sm:$0xff] }
 0x147   : > { %1930 = vmatprep.subr.bf16.mxu1 %v1929_v63  ;;  %v997_v63 = vld [vmem:[%s3129_s7 + $0x288] sm:$0xff] }
 0x14a   : > { %1932 = vmatpush1.bf16.msra.mxu1 %v1931_v4  ;;  %v1987_v4 = vpack.c.bf16 %v997_v63, %v990_v61 }
 0x14b   : > { %1966 = vmatprep.subr.bf16.mxu1 %v1965_v10  ;;  %v1013_v10 = vld [vmem:[%s3129_s7 + $0x308] sm:$0xff] }
 0x200   : > { %v817_v17 = vpop.f32.mrb[4].mxu1 }
 0x201   : > { %v818_v20 = vadd.f32 %v1478_v14, %v817_v17  ;;  %v1683_v21 = vpop.f32.mrb[5].mxu1  ;;  %v922_v14 = vld [vmem:[%s3129_s7 + $0x30] sm:$0xff]  ;;  %v935_v17 = vld [vmem:[%s3129_s7 + $0x98] sm:$0xff] }
 0x202   : > { %v1967_v21 = vpack.c.bf16 %v927_v13, %v920_v12  ;;  %v1969_v25 = vpack.c.bf16 %v942_v18, %v935_v17  ;;  %v1026_v12 = vld [vmem:[%s3129_s7 + $0x370] sm:$0xff]  ;;  %v1991_v13 = vpack.c.bf16 %v1011_v8, %v1004_v6  ;;  %v1025_v17 = vld [vmem:[%s3129_s7 + $0x368] sm:$0xff]  ;;  %v1020_v18 = vld [vmem:[%s3129_s7 + $0x340] sm:$0xff] }
 0x203   : > { %v821_v23 = vmax.f32 %v818_v20, 0.0 }
 0x205   : > { %1717 = vmatmul.mubr.f32.vlgmr.msra.gmra.mrb[4].mxu0 %v821_v23  ;;  %v934_v23 = vld [vmem:[%s3129_s7 + $0x90] sm:$0xff] }
 0x206   : > { %1936 = vmatpush1.bf16.msra.mxu0 %v1935_v22  ;;  %1200 = vmatprep.mubr.f32.mxu0 %v2160_v60  ;;  %v1998_v22 = vpack.c.bf16 %v929_v15, %v922_v14  ;;  %v1971_v31 = vpack.c.bf16 %v941_v26, %v934_v23  ;;  %v2016_v14 = vpack.c.bf16 %v1013_v10, %v1006_v9  ;;  %v1018_v15 = vld [vmem:[%s3129_s7 + $0x330] sm:$0xff] }
 0x207   : > { %1938 = vmatprep.subr.bf16.mxu0 %v1937_v24 }
 0x20a   : > { %1940 = vmatpush1.bf16.msra.mxu0 %v1939_v29  ;;  %v949_v29 = vld [vmem:[%s3129_s7 + $0x108] sm:$0xff] }
 0x20b   : > { %1942 = vmatprep.subr.bf16.mxu0 %v1941_v30  ;;  %v956_v30 = vld [vmem:[%s3129_s7 + $0x140] sm:$0xff] }
 0x20c   : > { %v1973_v34 = vpack.c.bf16 %v956_v30, %v949_v29 }
 0x20e   : > { %1944 = vmatpush1.bf16.msra.mxu0 %v1943_v35  ;;  %v955_v35 = vld [vmem:[%s3129_s7 + $0x138] sm:$0xff] }
 0x20f   : > { %1946 = vmatprep.subr.bf16.mxu0 %v1945_v36  ;;  %v950_v36 = vld [vmem:[%s3129_s7 + $0x110] sm:$0xff]  ;;  %v1975_v40 = vpack.c.bf16 %v955_v35, %v948_v33 }
 0x212   : > { %1948 = vmatpush1.bf16.msra.mxu0 %v1947_v41  ;;  %v2004_v41 = vpack.c.bf16 %v957_v37, %v950_v36 }
 0x213   : > { %1950 = vmatprep.subr.bf16.mxu0 %v1949_v42  ;;  %v962_v42 = vld [vmem:[%s3129_s7 + $0x170] sm:$0xff] }
 0x216   : > { %1952 = vmatpush1.bf16.msra.mxu0 %v1951_v47  ;;  %v984_v47 = vld [vmem:[%s3129_s7 + $0x220] sm:$0xff] }
 0x217   : > { %1954 = vmatprep.subr.bf16.mxu0 %v1953_v48  ;;  %v1979_v48 = vpack.c.bf16 %v969_v44, %v962_v42  ;;  %v1981_v52 = vpack.c.bf16 %v984_v47, %v977_v46 }
 0x21a   : > { %1956 = vmatpush1.bf16.msra.mxu0 %v1955_v54  ;;  %v978_v54 = vld [vmem:[%s3129_s7 + $0x1f0] sm:$0xff] }
 0x21b   : > { %1958 = vmatprep.subr.bf16.mxu0 %v1957_v55  ;;  %v985_v55 = vld [vmem:[%s3129_s7 + $0x228] sm:$0xff] }
 0x21c   : > { %v2010_v59 = vpack.c.bf16 %v985_v55, %v978_v54 }
 0x21e   : > { %1960 = vmatpush1.bf16.msra.mxu0 %v1959_v58  ;;  %v1983_v58 = vpack.c.bf16 %v983_v53, %v976_v51 }
 0x21f   : > { %1962 = vmatprep.subr.bf16.mxu0 %v1961_v3  ;;  %v1012_v3 = vld [vmem:[%s3129_s7 + $0x300] sm:$0xff] }
 0x222   : > { %1964 = vmatpush1.bf16.msra.mxu0 %v1963_v7  ;;  %v1989_v7 = vpack.c.bf16 %v1012_v3, %v1005_v2 }
 0x223   : > { %1997 = vmatprep.subr.bf16.mxu0 %v2158_v50 }
 0x2d8   : > { %v911_v16 = vpop.f32.mrb[4].mxu0 }
 0x2d9   : > { %v912_v19 = vadd.f32 %v1479_v11, %v911_v16  ;;  %v1718_v20 = vpop.f32.mrb[5].mxu0  ;;  %v1019_v11 = vld [vmem:[%s3129_s7 + $0x338] sm:$0xff] }
 0x2da   : > { %v1993_v16 = vpack.c.bf16 %v1026_v12, %v1019_v11  ;;  %v1995_v20 = vpack.c.bf16 %v1025_v17, %v1018_v15 }
 0x2db   : > { %v2924_v24 = vmax.f32 %v912_v19, 0.0  ;;  %v1027_v19 = vld [vmem:[%s3129_s7 + $0x378] sm:$0xff] }
 0x2dd   : > { %1130 = vmatmul.mubr.f32.vlgmr.msra.gmra.mrb[6].mxu1 %v2924_v24  ;;  %1201 = vmatmul.mubr.f32.vlgmr.msra.gmra.mrb[6].mxu0 %v2924_v24 }
 0x2de   : > { %1968 = vmatpush1.bf16.msra.mxu1 %v1967_v21  ;;  %1999 = vmatpush3.bf16.msra.mxu0 %v1998_v22  ;;  %v2019_v21 = vpack.c.bf16 %v1027_v19, %v1020_v18  ;;  %v1030_v22 = vlaneseq }
 0x2df   : > { %1970 = vmatprep.subr.bf16.mxu1 %v1969_v25  ;;  %2000 = vmatprep.subr.bf16.mxu0 %v2158_v50 }
 0x2e0   : > { %1271 = vmatprep.mubr.f32.mxu1 %v2160_v60  ;;  %1751 = vmatprep.mubr.msk.f32.mxu0 %vm2159_vm0, %v2160_v60  ;;  %v964_v60 = vld [vmem:[%s3129_s7 + $0x180] sm:$0xff]  ;;  %v1031_v23 = vshrl.u32 %v1030_v22, 7 }
 0x2e1   : > { %v2007_v49 = vpack.c.bf16 %v971_v45, %v964_v60 }
 0x2e2   : > { %1972 = vmatpush1.bf16.msra.mxu1 %v1971_v31  ;;  %2002 = vmatpush3.bf16.msra.mxu0 %v2001_v32  ;;  %v1032_v25 = vsub.s32 0, %v1031_v23  ;;  %v1040_v26 = vsub.s32 2, %v1031_v23  ;;  %v1036_v28 = vsub.s32 1, %v1031_v23  ;;  %v1044_v29 = vsub.s32 3, %v1031_v23 }
 0x2e3   : > { %1974 = vmatprep.subr.bf16.mxu1 %v1973_v34  ;;  %2003 = vmatprep.subr.bf16.mxu0 %v2158_v50  ;;  %v1048_v56 = vsub.s32 4, %v1031_v23  ;;  %v1056_v57 = vsub.s32 6, %v1031_v23 }
 0x2e4   : > { %v1033_v30 = vrot.slane %v1028_v27, %v1032_v25  ;;  %v1041_v31 = vrot.slane %v1028_v27, %v1040_v26  ;;  %v1037_v32 = vrot.slane %v1028_v27, %v1036_v28 }
 0x2e5   : > { %v1057_v61 = vrot.slane %v1028_v27, %v1056_v57 }
 0x2e6   : > { %1976 = vmatpush1.bf16.msra.mxu1 %v1975_v40  ;;  %2005 = vmatpush3.bf16.msra.mxu0 %v2004_v41 }
 0x2e7   : > { %1978 = vmatprep.subr.bf16.mxu1 %v1977_v43  ;;  %2006 = vmatprep.subr.bf16.mxu0 %v2158_v50 }
 0x2ea   : > { %1980 = vmatpush1.bf16.msra.mxu1 %v1979_v48  ;;  %2008 = vmatpush3.bf16.msra.mxu0 %v2007_v49 }
 0x2eb   : > { %1982 = vmatprep.subr.bf16.mxu1 %v1981_v52  ;;  %2009 = vmatprep.subr.bf16.mxu0 %v2158_v50 }
 0x2ee   : > { %1984 = vmatpush1.bf16.msra.mxu1 %v1983_v58  ;;  %2011 = vmatpush3.bf16.msra.mxu0 %v2010_v59  ;;  %v1052_v58 = vsub.s32 5, %v1031_v23  ;;  %v1049_v59 = vrot.slane %v1028_v27, %v1048_v56 }
 0x2ef   : > { %1986 = vmatprep.subr.bf16.mxu1 %v1985_v62  ;;  %2012 = vmatprep.subr.bf16.mxu0 %v2158_v50 }
 0x2f0   : > { %v1053_v63 = vrot.slane %v1028_v27, %v1052_v58 }
 0x2f2   : > { %1988 = vmatpush1.bf16.msra.mxu1 %v1987_v4  ;;  %2014 = vmatpush3.bf16.msra.mxu0 %v2013_v5 }
 0x2f3   : > { %1990 = vmatprep.subr.bf16.mxu1 %v1989_v7  ;;  %2015 = vmatprep.subr.bf16.mxu0 %v2158_v50 }
 0x2f6   : > { %1992 = vmatpush1.bf16.msra.mxu1 %v1991_v13  ;;  %2017 = vmatpush3.bf16.msra.mxu0 %v2016_v14 }
 0x2f7   : > { %1994 = vmatprep.subr.bf16.mxu1 %v1993_v16  ;;  %2018 = vmatprep.subr.bf16.mxu0 %v2158_v50  ;;  %v1045_v50 = vrot.slane %v1028_v27, %v1044_v29 }
 0x2fa   : > { %1996 = vmatpush1.bf16.msra.mxu1 %v1995_v20  ;;  %2020 = vmatpush3.bf16.msra.mxu0 %v2019_v21 }
 0x2fd   : > { %1272 = vmatmul.mubr.f32.vlgmr.msra.gmra.mrb[8].mxu1 %v2924_v24  ;;  %1752 = vmatmul.mubr.f32.vlgmr.msra.gmra.mrb[8].mxu0 %v2924_v24 }
 0x3b0   : > { %v1131_v33 = vpop.f32.mrb[6].mxu1  ;;  %v1202_v34 = vpop.f32.mrb[6].mxu0 }
 0x3b1   : > { %v1132_v35 = vadd.f32 %v1131_v33, %v1033_v30  ;;  %v1203_v36 = vadd.f32 %v1202_v34, %v1041_v31  ;;  %v1133_v37 = vpop.f32.mrb[7].mxu1  ;;  %v1204_v24 = vpop.f32.mrb[7].mxu0 }
 0x3b2   : > { %v1134_v38 = vadd.f32 %v1133_v37, %v1037_v32  ;;  %v1205_v39 = vadd.f32 %v1204_v24, %v1045_v50 }
 0x3b3   : > { %v1348_v40 = vsub.f32 0.0, %v1132_v35  ;;  %v1350_v41 = vsub.f32 0.0, %v1203_v36 }
 0x3b4   : > { %v1349_v42 = vsub.f32 0.0, %v1134_v38  ;;  %v1351_v43 = vsub.f32 0.0, %v1205_v39 }
 0x3b5   : > { %v1355_v44 = vmul.f32 1.442695, %v1348_v40  ;;  %v1359_v60 = vmul.f32 1.442695, %v1350_v41 }
 0x3b6   : > { %v1357_v45 = vmul.f32 1.442695, %v1349_v42  ;;  %v1361_v46 = vmul.f32 1.442695, %v1351_v43 }
 0x3b7   : > { %2066 = vpow2.f32 %v1355_v44 }
 0x3b8   : > { %2068 = vpow2.f32 %v1359_v60 }
 0x3b9   : > { %2070 = vpow2.f32 %v1357_v45 }
 0x3ba   : > { %2072 = vpow2.f32 %v1361_v46 }
 0x3c1   : > { %v2067_v47 = vpop.eup %2066 }
 0x3c2   : > { %v2069_v48 = vpop.eup %2068  ;;  %v1369_v49 = vadd.f32 1.0, %v2067_v47 }
 0x3c3   : > { %v2071_v51 = vpop.eup %2070  ;;  %v1371_v52 = vadd.f32 1.0, %v2069_v48 }
 0x3c4   : > { %v2073_v53 = vpop.eup %2072  ;;  %2074 = vrcp.f32 %v1369_v49  ;;  %v1370_v54 = vadd.f32 1.0, %v2071_v51 }
 0x3c5   : > { %2076 = vrcp.f32 %v1371_v52  ;;  %v1372_v55 = vadd.f32 1.0, %v2073_v53 }
 0x3c6   : > { %2078 = vrcp.f32 %v1370_v54 }
 0x3c7   : > { %2080 = vrcp.f32 %v1372_v55 }
 0x3ce   : > { %v2075_v62 = vpop.eup %2074 }
 0x3cf   : > { %v2077_v0 = vpop.eup %2076  ;;  %1390 = vst [vmem:[%s3063_s21] sm:$0xff] %v2075_v62 }
 0x3d0   : > { %v2079_v1 = vpop.eup %2078  ;;  %1392 = vst [vmem:[%s3063_s21 + $0x10] sm:$0xff] %v2077_v0  ;;  %v1273_v2 = vpop.f32.mrb[8].mxu1 }
 0x3d1   : > { %v1344_v3 = vpop.f32.mrb[8].mxu0  ;;  %v2081_v4 = vpop.eup %2080  ;;  %1391 = vst [vmem:[%s3063_s21 + $0x8] sm:$0xff] %v2079_v1  ;;  %v1274_v5 = vadd.f32 %v1273_v2, %v1049_v59 }
 0x3d2   : > { %v1345_v6 = vadd.f32 %v1344_v3, %v1057_v61  ;;  %v1275_v7 = vpop.f32.mrb[9].mxu1  ;;  %v1753_v8 = vpop.f32.mrb[9].mxu0  ;;  %1393 = vst [vmem:[%s3063_s21 + $0x18] sm:$0xff] %v2081_v4 }
 0x3d3   : > { %v1276_v9 = vadd.f32 %v1275_v7, %v1053_v63  ;;  %v1352_v10 = vsub.f32 0.0, %v1274_v5 }
 0x3d4   : > { %v1354_v11 = vsub.f32 0.0, %v1345_v6 }
 0x3d5   : > { %v1353_v12 = vsub.f32 0.0, %v1276_v9  ;;  %v1363_v13 = vmul.f32 1.442695, %v1352_v10 }
 0x3d6   : > { %v1367_v14 = vmul.f32 1.442695, %v1354_v11 }
 0x3d7   : > { %v1365_v15 = vmul.f32 1.442695, %v1353_v12  ;;  %2082 = vpow2.f32 %v1363_v13 }
 0x3d8   : > { %2084 = vpow2.f32 %v1367_v14 }
 0x3d9   : > { %2086 = vpow2.f32 %v1365_v15 }
 0x3e1   : > { %v2083_v16 = vpop.eup %2082 }
 0x3e2   : > { %v2085_v17 = vpop.eup %2084  ;;  %v1373_v18 = vadd.f32 1.0, %v2083_v16 }
 0x3e3   : > { %v2087_v19 = vpop.eup %2086  ;;  %v1375_v20 = vadd.f32 1.0, %v2085_v17 }
 0x3e4   : > { %2088 = vrcp.f32 %v1373_v18  ;;  %v1374_v21 = vadd.f32 1.0, %v2087_v19 }
 0x3e5   : > { %2090 = vrcp.f32 %v1375_v20 }
 0x3e6   : > { %2092 = vrcp.f32 %v1374_v21 }
 0x3ee   : > { %v2089_v22 = vpop.eup %2088 }
 0x3ef   : > { %v2091_v23 = vpop.eup %2090  ;;  %1394 = vst [vmem:[%s3063_s21 + $0x20] sm:$0xff] %v2089_v22 }
 0x3f0   : > { %v2093_v25 = vpop.eup %2092  ;;  %1396 = vst.msk [vmem:[%s3063_s21 + $0x30] sm:$0xff] %vm443_vm1, %v2091_v23 }
 0x3f1   : > { %1395 = vst [vmem:[%s3063_s21 + $0x28] sm:$0xff] %v2093_v25 }
 0x3f2   : > { %2107 = shalt.err (!%p2104_p3)
}
 0x3f3   : > { %s2108_s25 = scalar_lea.hbm %s3075_s22, 896  ;;  %s2112_s28 = scalar_lea.hbm %s3131_s9, 1792 }
 0x3f4   : > { %p2109_p4 = scmp.ne.s32.totalorder %s3075_s22, %s2108_s25  ;;  %p2113_p9 = scmp.lt.u32.totalorder %s3075_s22, %s3131_s9 }
 0x3f5   : > { %p2114_p10 = scmp.lt.u32.totalorder %s2112_s28, %s2108_s25  ;;  %p2116_p12 = scmp.lt.u32.totalorder %s2108_s25, %s3075_s22 }
 0x3f6   : > { %p2110_p7 = pnand %p2109_p4, %p2250_p5 }
 0x3f7   : > { %p2115_p11 = por %p2114_p10, %p2113_p9 }
 0x3f8   : > { %p2111_p8 = pneg %p2110_p7 }
 0x3f9   : > { %p2117_p13 = por %p2116_p12, %p2115_p11 }
 0x3fb   : > { %p2118_p0 = pnand %p2117_p13, %p2111_p8 }
 0x3fd   : > { %2121 = shalt.err (!%p2118_p0)
}
 0x3fe   : > { %2024 = dma.vmem_to_hbm [thread:$0]  (%p2250_p5), %s3077_s14, 896, %s3075_s22, %s1398_s13  }
 0x3ff PF: > { %p2030_p1 = scmp.ge.s32.totalorder %s2156_s12, 2  ;;  %s1424_s23 = sand.u32 1, %s2144_s30  }
 0x400   : > { %s1425_s29 = scalar_lea.sflag [#allocation3], %s1424_s23 }
 0x401   : > { %p2027_p2 = pnand %p2030_p1, %p2254_p6 }
 0x403   : > { %2139 = dma.done.wait (!%p2027_p2), %s1425_s29, 896  }
 0x404   : > { %2141 = vsyncadd (!%p2027_p2), %s1425_s29, 4294966400  ;;  %p19_p3 = scmp.ge.s32.totalorder %s2237_s15, 4   ;;  %s3134_s30 = smov %s2148_s10 }
 0x405   : > { %s3135_s10 = smov %s2152_s11  ;;  %s3136_s11 = smov %s2248_s18 }
 0x406   : > { %s3137_s12 = smov %s2237_s15  ;;  %21 = sbr.rel (!%p19_p3) target bundleno = 3 (0x3), region = 91 }
 0x40d   :  { %1430 = vsyncpa [#allocation3], 1 }
 0x40e   :  { %1432 = vsyncpa [#allocation3 + $0x1], 1 }

</bundles_post_ra>
